<compile_context>
chip_gen: v7x
topology: tpu7x:2x2x1
jax: 0.10.0
libtpu: 0.0.40
codegen_flags: <defaults>
</compile_context>

<pallas_src>
import functools
import itertools

import jax
import jax.numpy as jnp
import numpy as np
from jax.experimental import pallas as pl
from jax.experimental.pallas import tpu as pltpu

ALPHA = 0.25   # focal alpha (hard-coded in reference forward)
GAMMA = 2.0    # focal gamma (hard-coded as prob**2 below, matching reference)
EPS = 1e-8


def _round_up(x, m):
    return ((x + m - 1) // m) * m


def _fast_recip(x):
    """EUP approx reciprocal + one Newton step (VPU) ~= full f32 1/x."""
    r = pl.reciprocal(x, approx=True)
    return r * (2.0 - x * r)


def _cost_kernel(logits_ref, qbox_ref, onehot_ref, tgt_ref, c_ref,
                 *, w_class, w_bbox, w_giou):
    # ---- classification cost: gather logits first (linear), focal math on [tile_n, Tp]
    g = jnp.dot(logits_ref[...], onehot_ref[...],
                preferred_element_type=jnp.float32)        # [tile_n, Tp]
    prob = jax.nn.sigmoid(g)
    one_m = 1.0 - prob
    neg_cost = (1.0 - ALPHA) * (prob * prob) * (-jnp.log(one_m + EPS))
    pos_cost = ALPHA * (one_m * one_m) * (-jnp.log(prob + EPS))
    c = w_class * (pos_cost - neg_cost)                    # running accumulator

    # ---- query-side box pieces [tile_n, 1]
    qcx = qbox_ref[:, 0:1]
    qcy = qbox_ref[:, 1:2]
    qw = qbox_ref[:, 2:3]
    qh = qbox_ref[:, 3:4]

    # ---- target-side pieces (precomputed in wrapper) [1, Tp]
    tcx = tgt_ref[0:1, :]
    tcy = tgt_ref[1:2, :]
    tw = tgt_ref[2:3, :]
    th = tgt_ref[3:4, :]
    tx1 = tgt_ref[4:5, :]
    ty1 = tgt_ref[5:6, :]
    tx2 = tgt_ref[6:7, :]
    ty2 = tgt_ref[7:8, :]
    area_t = tgt_ref[8:9, :]

    # ---- L1 box cost (cdist p=1)
    c += w_bbox * (jnp.abs(qcx - tcx) + jnp.abs(qcy - tcy)
                   + jnp.abs(qw - tw) + jnp.abs(qh - th))

    # ---- generalized IoU cost
    qx1 = qcx - 0.5 * qw
    qy1 = qcy - 0.5 * qh
    qx2 = qcx + 0.5 * qw
    qy2 = qcy + 0.5 * qh
    area_q = (qx2 - qx1) * (qy2 - qy1)                     # [tile_n, 1]

    iw = jnp.maximum(jnp.minimum(qx2, tx2) - jnp.maximum(qx1, tx1), 0.0)
    ih = jnp.maximum(jnp.minimum(qy2, ty2) - jnp.maximum(qy1, ty1), 0.0)
    inter = iw * ih
    union = area_q + area_t - inter
    iou = inter * _fast_recip(union)

    ew = jnp.maximum(qx2, tx2) - jnp.minimum(qx1, tx1)
    eh = jnp.maximum(qy2, ty2) - jnp.minimum(qy1, ty1)
    enclose = ew * eh
    giou = iou - (enclose - union) * _fast_recip(enclose)

    c_ref[...] = c - w_giou * giou


def hungarian_cost_matrix(pred_logits, pred_boxes, tgt_ids, tgt_bbox,
                          cost_class=2.0, cost_bbox=5.0, cost_giou=2.0,
                          tile_n=256):
    """Returns C with shape [bs, num_queries, T] (T = total targets)."""
    bs, nq, nc = pred_logits.shape
    n = bs * nq
    t = int(tgt_ids.shape[0])

    # tile sizing: tile_n rows per grid step; chosen to sit far below v7x's
    # 64 MiB VMEM even with double-buffering (2*(tile_n*(Cp+Tp+4))*4B ~ 1 MiB).
    tile_n = min(tile_n, _round_up(n, 8))
    n_pad = _round_up(n, tile_n)
    c_pad = _round_up(nc, 128)
    t_pad = _round_up(max(t, 1), 128)

    # logits padded on rows (zeros) and classes (zeros; zero onehot rows ignore them)
    logits = pred_logits.reshape(n, nc).astype(jnp.float32)
    logits = jnp.pad(logits, ((0, n_pad - n), (0, c_pad - nc)))

    # query boxes; pad rows with benign unit boxes (discarded after slice)
    qbox = pred_boxes.reshape(n, 4).astype(jnp.float32)
    if n_pad > n:
        pad_rows = jnp.tile(jnp.array([[0.5, 0.5, 1.0, 1.0]], jnp.float32),
                            (n_pad - n, 1))
        qbox = jnp.concatenate([qbox, pad_rows], axis=0)

    # one-hot gather matrix [Cp, Tp]; padded target columns are all-zero
    onehot = jax.nn.one_hot(tgt_ids, nc, dtype=jnp.float32).T  # [C, T]
    onehot = jnp.pad(onehot, ((0, c_pad - nc), (0, t_pad - t)))

    # target boxes; pad with unit boxes so padded columns stay finite
    tb = tgt_bbox.astype(jnp.float32)
    if t_pad > t:
        pad_t = jnp.tile(jnp.array([[0.5, 0.5, 1.0, 1.0]], jnp.float32),
                         (t_pad - t, 1))
        tb = jnp.concatenate([tb, pad_t], axis=0)
    tcx, tcy, tw, th = tb[:, 0], tb[:, 1], tb[:, 2], tb[:, 3]
    tx1 = tcx - 0.5 * tw
    ty1 = tcy - 0.5 * th
    tx2 = tcx + 0.5 * tw
    ty2 = tcy + 0.5 * th
    area_t = (tx2 - tx1) * (ty2 - ty1)
    tgt_packed = jnp.zeros((16, t_pad), jnp.float32)
    tgt_packed = (tgt_packed
                  .at[0].set(tcx).at[1].set(tcy).at[2].set(tw).at[3].set(th)
                  .at[4].set(tx1).at[5].set(ty1).at[6].set(tx2).at[7].set(ty2)
                  .at[8].set(area_t))

    kernel = functools.partial(_cost_kernel, w_class=float(cost_class),
                               w_bbox=float(cost_bbox), w_giou=float(cost_giou))

    grid = (n_pad // tile_n,)
    C = pl.pallas_call(
        kernel,
        out_shape=jax.ShapeDtypeStruct((n_pad, t_pad), jnp.float32),
        grid_spec=pltpu.PrefetchScalarGridSpec(
            num_scalar_prefetch=0,
            grid=grid,
            in_specs=[
                pl.BlockSpec((tile_n, c_pad), lambda i: (i, 0)),
                pl.BlockSpec((tile_n, 4), lambda i: (i, 0)),
                pl.BlockSpec((c_pad, t_pad), lambda i: (0, 0)),
                pl.BlockSpec((16, t_pad), lambda i: (0, 0)),
            ],
            out_specs=pl.BlockSpec((tile_n, t_pad), lambda i: (i, 0)),
        ),
        compiler_params=pltpu.CompilerParams(
            dimension_semantics=("parallel",)),
    )(logits, qbox, onehot, tgt_packed)

    return C[:n, :t].reshape(bs, nq, t)


def _linear_sum_assignment_bruteforce(cost):
    """Exact minimal assignment for tiny matrices (n_rows >= n_cols)."""
    n_rows, n_cols = cost.shape
    best_s, best_perm = None, None
    for perm in itertools.permutations(range(n_rows), n_cols):
        s = sum(cost[perm[j], j] for j in range(n_cols))
        if best_s is None or s < best_s:
            best_s, best_perm = s, perm
    pairs = sorted(zip(best_perm, range(n_cols)))
    rows = np.array([p[0] for p in pairs], dtype=np.int64)
    cols = np.array([p[1] for p in pairs], dtype=np.int64)
    return rows, cols


def hungarian_matcher(outputs, targets, cost_class=2.0, cost_bbox=5.0, cost_giou=2.0):
    tgt_ids = jnp.concatenate([v["labels"] for v in targets])
    tgt_bbox = jnp.concatenate([v["boxes"] for v in targets])

    C = hungarian_cost_matrix(outputs["pred_logits"], outputs["pred_boxes"],
                              tgt_ids, tgt_bbox,
                              cost_class=cost_class, cost_bbox=cost_bbox,
                              cost_giou=cost_giou)
    C = np.asarray(jax.block_until_ready(C))

    # TODO(synk): linear_sum_assignment (Hungarian solve) has no Pallas equivalent; exact host-side brute force for tiny matrices only.
    sizes = [int(v["boxes"].shape[0]) for v in targets]
    indices, off = [], 0
    for i, s in enumerate(sizes):
        block = C[i, :, off:off + s]
        indices.append(_linear_sum_assignment_bruteforce(block))
        off += s
    return indices, C


def _reference_cost(pred_logits, pred_boxes, tgt_ids, tgt_bbox,
                    cost_class=2.0, cost_bbox=5.0, cost_giou=2.0):
    """Pure numpy reference mirroring the PyTorch forward."""
    pl_ = np.asarray(pred_logits, np.float32)
    pb = np.asarray(pred_boxes, np.float32)
    ti = np.asarray(tgt_ids)
    tb = np.asarray(tgt_bbox, np.float32)
    bs, nq, nc = pl_.shape
    prob = 1.0 / (1.0 + np.exp(-pl_.reshape(bs * nq, nc)))
    obox = pb.reshape(bs * nq, 4)
    neg = (1 - ALPHA) * prob ** GAMMA * -np.log(1 - prob + EPS)
    pos = ALPHA * (1 - prob) ** GAMMA * -np.log(prob + EPS)
    cc = (pos - neg)[:, ti]
    cb = np.abs(obox[:, None, :] - tb[None, :, :]).sum(-1)

    def to_xyxy(b):
        cx, cy, w, h = b[:, 0], b[:, 1], b[:, 2], b[:, 3]
        return np.stack([cx - w / 2, cy - h / 2, cx + w / 2, cy + h / 2], -1)

    b1, b2 = to_xyxy(obox), to_xyxy(tb)
    a1 = (b1[:, 2] - b1[:, 0]) * (b1[:, 3] - b1[:, 1])
    a2 = (b2[:, 2] - b2[:, 0]) * (b2[:, 3] - b2[:, 1])
    lt = np.maximum(b1[:, None, :2], b2[None, :, :2])
    rb = np.minimum(b1[:, None, 2:], b2[None, :, 2:])
    wh = np.clip(rb - lt, 0, None)
    inter = wh[..., 0] * wh[..., 1]
    union = a1[:, None] + a2[None, :] - inter
    iou = inter / union
    lti = np.minimum(b1[:, None, :2], b2[None, :, :2])
    rbi = np.maximum(b1[:, None, 2:], b2[None, :, 2:])
    whi = np.clip(rbi - lti, 0, None)
    areai = whi[..., 0] * whi[..., 1]
    giou = iou - (areai - union) / areai
    C = cost_bbox * cb + cost_class * cc + cost_giou * (-giou)
    return C.reshape(bs, nq, -1)


if __name__ == "__main__":
    key = jax.random.PRNGKey(0)
    bs, num_queries, num_classes = 2, 8, 32
    n_tgt_per_image = 3

    k1, k2, k3, k4 = jax.random.split(key, 4)
    pred_logits = jax.random.normal(k1, (bs, num_queries, num_classes), jnp.float32)
    cxcy = jax.random.uniform(k2, (bs, num_queries, 2), minval=0.2, maxval=0.8)
    wh = jax.random.uniform(k3, (bs, num_queries, 2), minval=0.05, maxval=0.3)
    pred_boxes = jnp.concatenate([cxcy, wh], axis=-1)

    targets = []
    tkeys = jax.random.split(k4, bs * 3)
    for i in range(bs):
        labels = jax.random.randint(tkeys[3 * i], (n_tgt_per_image,), 0, num_classes)
        tcxcy = jax.random.uniform(tkeys[3 * i + 1], (n_tgt_per_image, 2), minval=0.2, maxval=0.8)
        twh = jax.random.uniform(tkeys[3 * i + 2], (n_tgt_per_image, 2), minval=0.05, maxval=0.3)
        targets.append({"labels": labels, "boxes": jnp.concatenate([tcxcy, twh], axis=-1)})

    outputs = {"pred_logits": pred_logits, "pred_boxes": pred_boxes}

    indices, C_kernel = hungarian_matcher(outputs, targets)

    # Sanity-check the Pallas cost matrix against a pure-numpy reference.
    tgt_ids = jnp.concatenate([v["labels"] for v in targets])
    tgt_bbox = jnp.concatenate([v["boxes"] for v in targets])
    C_ref = _reference_cost(pred_logits, pred_boxes, tgt_ids, tgt_bbox)
    np.testing.assert_allclose(np.asarray(C_kernel), C_ref, rtol=2e-3, atol=2e-3)

    for rows, cols in indices:
        assert rows.dtype == np.int64 and cols.dtype == np.int64

    print("KERNEL_OK")
</pallas_src>

<mosaic_0001>
module attributes {stable_mosaic.version = 11 : i64} {
  func.func @_cost_kernel(%arg0: i32, %arg1: memref<16x128xf32, #tpu.memory_space<vmem>>, %arg2: memref<16x4xf32, #tpu.memory_space<vmem>>, %arg3: memref<128x128xf32, #tpu.memory_space<vmem>>, %arg4: memref<16x128xf32, #tpu.memory_space<vmem>>, %arg5: memref<16x128xf32, #tpu.memory_space<vmem>>) attributes {dimension_semantics = [#tpu.dimension_semantics<parallel>], iteration_bounds = array<i64: 1>, scalar_prefetch = 0 : i64, scratch_operands = 0 : i64, tpu.core_type = #tpu.core_type<tc>, window_params = [{transform_indices = @transform_0, window_bounds = array<i64: 16, 128>}, {transform_indices = @transform_1, window_bounds = array<i64: 16, 4>}, {pipeline_mode = #tpu.pipeline_mode<synchronous>, transform_indices = @transform_2, window_bounds = array<i64: 128, 128>}, {pipeline_mode = #tpu.pipeline_mode<synchronous>, transform_indices = @transform_3, window_bounds = array<i64: 16, 128>}, {transform_indices = @transform_4, window_bounds = array<i64: 16, 128>}]} {
    %c0 = arith.constant 0 : index
    %c0_0 = arith.constant 0 : index
    %0 = vector.load %arg1[%c0, %c0_0] : memref<16x128xf32, #tpu.memory_space<vmem>>, vector<16x128xf32>
    %c0_1 = arith.constant 0 : index
    %c0_2 = arith.constant 0 : index
    %1 = vector.load %arg3[%c0_1, %c0_2] : memref<128x128xf32, #tpu.memory_space<vmem>>, vector<128x128xf32>
    %cst = arith.constant dense<0.000000e+00> : vector<16x128xf32>
    %2 = tpu.matmul %0, %1, %cst {dimension_numbers = #tpu.dot_dimension_numbers<[1], [0], [0], [1], [0, 0, 1, 1], [], []>} : vector<16x128xf32>, vector<128x128xf32>, vector<16x128xf32> -> vector<16x128xf32>
    %3 = arith.negf %2 : vector<16x128xf32>
    %4 = math.exp %3 : vector<16x128xf32>
    %cst_3 = arith.constant 1.000000e+00 : f32
    %5 = vector.broadcast %cst_3 : f32 to vector<16x128xf32>
    %6 = arith.addf %5, %4 : vector<16x128xf32>
    %7 = arith.divf %5, %6 : vector<16x128xf32>
    %cst_4 = arith.constant 1.000000e+00 : f32
    %8 = vector.broadcast %cst_4 : f32 to vector<16x128xf32>
    %9 = arith.subf %8, %7 : vector<16x128xf32>
    %10 = arith.mulf %7, %7 : vector<16x128xf32>
    %cst_5 = arith.constant 7.500000e-01 : f32
    %11 = vector.broadcast %cst_5 : f32 to vector<16x128xf32>
    %12 = arith.mulf %11, %10 : vector<16x128xf32>
    %cst_6 = arith.constant 9.99999993E-9 : f32
    %13 = vector.broadcast %cst_6 : f32 to vector<16x128xf32>
    %14 = arith.addf %9, %13 : vector<16x128xf32>
    %15 = math.log %14 : vector<16x128xf32>
    %cst_7 = arith.constant 0.000000e+00 : f32
    %16 = vector.broadcast %cst_7 : f32 to vector<16x128xf32>
    %17 = arith.subf %16, %15 : vector<16x128xf32>
    %18 = arith.mulf %12, %17 : vector<16x128xf32>
    %19 = arith.mulf %9, %9 : vector<16x128xf32>
    %cst_8 = arith.constant 2.500000e-01 : f32
    %20 = vector.broadcast %cst_8 : f32 to vector<16x128xf32>
    %21 = arith.mulf %20, %19 : vector<16x128xf32>
    %cst_9 = arith.constant 9.99999993E-9 : f32
    %22 = vector.broadcast %cst_9 : f32 to vector<16x128xf32>
    %23 = arith.addf %7, %22 : vector<16x128xf32>
    %24 = math.log %23 : vector<16x128xf32>
    %cst_10 = arith.constant 0.000000e+00 : f32
    %25 = vector.broadcast %cst_10 : f32 to vector<16x128xf32>
    %26 = arith.subf %25, %24 : vector<16x128xf32>
    %27 = arith.mulf %21, %26 : vector<16x128xf32>
    %28 = arith.subf %27, %18 : vector<16x128xf32>
    %cst_11 = arith.constant 2.000000e+00 : f32
    %29 = vector.broadcast %cst_11 : f32 to vector<16x128xf32>
    %30 = arith.mulf %29, %28 : vector<16x128xf32>
    %c0_12 = arith.constant 0 : index
    %c0_13 = arith.constant 0 : index
    %31 = vector.load %arg2[%c0_12, %c0_13] : memref<16x4xf32, #tpu.memory_space<vmem>>, vector<16x1xf32>
    %c0_14 = arith.constant 0 : index
    %c1 = arith.constant 1 : index
    %32 = vector.load %arg2[%c0_14, %c1] : memref<16x4xf32, #tpu.memory_space<vmem>>, vector<16x1xf32>
    %c0_15 = arith.constant 0 : index
    %c2 = arith.constant 2 : index
    %33 = vector.load %arg2[%c0_15, %c2] : memref<16x4xf32, #tpu.memory_space<vmem>>, vector<16x1xf32>
    %c0_16 = arith.constant 0 : index
    %c3 = arith.constant 3 : index
    %34 = vector.load %arg2[%c0_16, %c3] : memref<16x4xf32, #tpu.memory_space<vmem>>, vector<16x1xf32>
    %c0_17 = arith.constant 0 : index
    %c0_18 = arith.constant 0 : index
    %35 = vector.load %arg4[%c0_17, %c0_18] : memref<16x128xf32, #tpu.memory_space<vmem>>, vector<1x128xf32>
    %c1_19 = arith.constant 1 : index
    %c0_20 = arith.constant 0 : index
    %36 = vector.load %arg4[%c1_19, %c0_20] : memref<16x128xf32, #tpu.memory_space<vmem>>, vector<1x128xf32>
    %c2_21 = arith.constant 2 : index
    %c0_22 = arith.constant 0 : index
    %37 = vector.load %arg4[%c2_21, %c0_22] : memref<16x128xf32, #tpu.memory_space<vmem>>, vector<1x128xf32>
    %c3_23 = arith.constant 3 : index
    %c0_24 = arith.constant 0 : index
    %38 = vector.load %arg4[%c3_23, %c0_24] : memref<16x128xf32, #tpu.memory_space<vmem>>, vector<1x128xf32>
    %c4 = arith.constant 4 : index
    %c0_25 = arith.constant 0 : index
    %39 = vector.load %arg4[%c4, %c0_25] : memref<16x128xf32, #tpu.memory_space<vmem>>, vector<1x128xf32>
    %c5 = arith.constant 5 : index
    %c0_26 = arith.constant 0 : index
    %40 = vector.load %arg4[%c5, %c0_26] : memref<16x128xf32, #tpu.memory_space<vmem>>, vector<1x128xf32>
    %c6 = arith.constant 6 : index
    %c0_27 = arith.constant 0 : index
    %41 = vector.load %arg4[%c6, %c0_27] : memref<16x128xf32, #tpu.memory_space<vmem>>, vector<1x128xf32>
    %c7 = arith.constant 7 : index
    %c0_28 = arith.constant 0 : index
    %42 = vector.load %arg4[%c7, %c0_28] : memref<16x128xf32, #tpu.memory_space<vmem>>, vector<1x128xf32>
    %c8 = arith.constant 8 : index
    %c0_29 = arith.constant 0 : index
    %43 = vector.load %arg4[%c8, %c0_29] : memref<16x128xf32, #tpu.memory_space<vmem>>, vector<1x128xf32>
    %44 = vector.broadcast %31 : vector<16x1xf32> to vector<16x128xf32>
    %45 = vector.broadcast %35 : vector<1x128xf32> to vector<16x128xf32>
    %46 = arith.subf %44, %45 : vector<16x128xf32>
    %47 = math.absf %46 : vector<16x128xf32>
    %48 = vector.broadcast %32 : vector<16x1xf32> to vector<16x128xf32>
    %49 = vector.broadcast %36 : vector<1x128xf32> to vector<16x128xf32>
    %50 = arith.subf %48, %49 : vector<16x128xf32>
    %51 = math.absf %50 : vector<16x128xf32>
    %52 = arith.addf %47, %51 : vector<16x128xf32>
    %53 = vector.broadcast %33 : vector<16x1xf32> to vector<16x128xf32>
    %54 = vector.broadcast %37 : vector<1x128xf32> to vector<16x128xf32>
    %55 = arith.subf %53, %54 : vector<16x128xf32>
    %56 = math.absf %55 : vector<16x128xf32>
    %57 = arith.addf %52, %56 : vector<16x128xf32>
    %58 = vector.broadcast %34 : vector<16x1xf32> to vector<16x128xf32>
    %59 = vector.broadcast %38 : vector<1x128xf32> to vector<16x128xf32>
    %60 = arith.subf %58, %59 : vector<16x128xf32>
    %61 = math.absf %60 : vector<16x128xf32>
    %62 = arith.addf %57, %61 : vector<16x128xf32>
    %cst_30 = arith.constant 5.000000e+00 : f32
    %63 = vector.broadcast %cst_30 : f32 to vector<16x128xf32>
    %64 = arith.mulf %63, %62 : vector<16x128xf32>
    %65 = arith.addf %30, %64 : vector<16x128xf32>
    %cst_31 = arith.constant 5.000000e-01 : f32
    %66 = vector.broadcast %cst_31 : f32 to vector<16x1xf32>
    %67 = arith.mulf %66, %33 : vector<16x1xf32>
    %68 = arith.subf %31, %67 : vector<16x1xf32>
    %cst_32 = arith.constant 5.000000e-01 : f32
    %69 = vector.broadcast %cst_32 : f32 to vector<16x1xf32>
    %70 = arith.mulf %69, %34 : vector<16x1xf32>
    %71 = arith.subf %32, %70 : vector<16x1xf32>
    %cst_33 = arith.constant 5.000000e-01 : f32
    %72 = vector.broadcast %cst_33 : f32 to vector<16x1xf32>
    %73 = arith.mulf %72, %33 : vector<16x1xf32>
    %74 = arith.addf %31, %73 : vector<16x1xf32>
    %cst_34 = arith.constant 5.000000e-01 : f32
    %75 = vector.broadcast %cst_34 : f32 to vector<16x1xf32>
    %76 = arith.mulf %75, %34 : vector<16x1xf32>
    %77 = arith.addf %32, %76 : vector<16x1xf32>
    %78 = arith.subf %74, %68 : vector<16x1xf32>
    %79 = arith.subf %77, %71 : vector<16x1xf32>
    %80 = arith.mulf %78, %79 : vector<16x1xf32>
    %81 = vector.broadcast %74 : vector<16x1xf32> to vector<16x128xf32>
    %82 = vector.broadcast %41 : vector<1x128xf32> to vector<16x128xf32>
    %83 = arith.minimumf %81, %82 : vector<16x128xf32>
    %84 = vector.broadcast %68 : vector<16x1xf32> to vector<16x128xf32>
    %85 = vector.broadcast %39 : vector<1x128xf32> to vector<16x128xf32>
    %86 = arith.maximumf %84, %85 : vector<16x128xf32>
    %87 = arith.subf %83, %86 : vector<16x128xf32>
    %cst_35 = arith.constant 0.000000e+00 : f32
    %88 = vector.broadcast %cst_35 : f32 to vector<16x128xf32>
    %89 = arith.maximumf %87, %88 : vector<16x128xf32>
    %90 = vector.broadcast %77 : vector<16x1xf32> to vector<16x128xf32>
    %91 = vector.broadcast %42 : vector<1x128xf32> to vector<16x128xf32>
    %92 = arith.minimumf %90, %91 : vector<16x128xf32>
    %93 = vector.broadcast %71 : vector<16x1xf32> to vector<16x128xf32>
    %94 = vector.broadcast %40 : vector<1x128xf32> to vector<16x128xf32>
    %95 = arith.maximumf %93, %94 : vector<16x128xf32>
    %96 = arith.subf %92, %95 : vector<16x128xf32>
    %cst_36 = arith.constant 0.000000e+00 : f32
    %97 = vector.broadcast %cst_36 : f32 to vector<16x128xf32>
    %98 = arith.maximumf %96, %97 : vector<16x128xf32>
    %99 = arith.mulf %89, %98 : vector<16x128xf32>
    %100 = vector.broadcast %80 : vector<16x1xf32> to vector<16x128xf32>
    %101 = vector.broadcast %43 : vector<1x128xf32> to vector<16x128xf32>
    %102 = arith.addf %100, %101 : vector<16x128xf32>
    %103 = arith.subf %102, %99 : vector<16x128xf32>
    %104 = tpu.reciprocal %103 {approx = true} : vector<16x128xf32> -> vector<16x128xf32>
    %105 = arith.mulf %103, %104 : vector<16x128xf32>
    %cst_37 = arith.constant 2.000000e+00 : f32
    %106 = vector.broadcast %cst_37 : f32 to vector<16x128xf32>
    %107 = arith.subf %106, %105 : vector<16x128xf32>
    %108 = arith.mulf %104, %107 : vector<16x128xf32>
    %109 = arith.mulf %99, %108 : vector<16x128xf32>
    %110 = vector.broadcast %74 : vector<16x1xf32> to vector<16x128xf32>
    %111 = vector.broadcast %41 : vector<1x128xf32> to vector<16x128xf32>
    %112 = arith.maximumf %110, %111 : vector<16x128xf32>
    %113 = vector.broadcast %68 : vector<16x1xf32> to vector<16x128xf32>
    %114 = vector.broadcast %39 : vector<1x128xf32> to vector<16x128xf32>
    %115 = arith.minimumf %113, %114 : vector<16x128xf32>
    %116 = arith.subf %112, %115 : vector<16x128xf32>
    %117 = vector.broadcast %77 : vector<16x1xf32> to vector<16x128xf32>
    %118 = vector.broadcast %42 : vector<1x128xf32> to vector<16x128xf32>
    %119 = arith.maximumf %117, %118 : vector<16x128xf32>
    %120 = vector.broadcast %71 : vector<16x1xf32> to vector<16x128xf32>
    %121 = vector.broadcast %40 : vector<1x128xf32> to vector<16x128xf32>
    %122 = arith.minimumf %120, %121 : vector<16x128xf32>
    %123 = arith.subf %119, %122 : vector<16x128xf32>
    %124 = arith.mulf %116, %123 : vector<16x128xf32>
    %125 = arith.subf %124, %103 : vector<16x128xf32>
    %126 = tpu.reciprocal %124 {approx = true} : vector<16x128xf32> -> vector<16x128xf32>
    %127 = arith.mulf %124, %126 : vector<16x128xf32>
    %cst_38 = arith.constant 2.000000e+00 : f32
    %128 = vector.broadcast %cst_38 : f32 to vector<16x128xf32>
    %129 = arith.subf %128, %127 : vector<16x128xf32>
    %130 = arith.mulf %126, %129 : vector<16x128xf32>
    %131 = arith.mulf %125, %130 : vector<16x128xf32>
    %132 = arith.subf %109, %131 : vector<16x128xf32>
    %cst_39 = arith.constant 2.000000e+00 : f32
    %133 = vector.broadcast %cst_39 : f32 to vector<16x128xf32>
    %134 = arith.mulf %133, %132 : vector<16x128xf32>
    %135 = arith.subf %65, %134 : vector<16x128xf32>
    %c0_40 = arith.constant 0 : index
    %c0_41 = arith.constant 0 : index
    %136 = vector.load %arg5[%c0_40, %c0_41] : memref<16x128xf32, #tpu.memory_space<vmem>>, vector<16x128xf32>
    tpu.vector_store %arg5[%c0_40, %c0_41], %135 {strides = array<i32>} : memref<16x128xf32, #tpu.memory_space<vmem>>, vector<16x128xf32>,
    return
  }
  func.func @transform_0(%arg0: i32) -> (i32, i32) {
    %c0_i32 = arith.constant 0 : i32
    %c0_i32_0 = arith.constant 0 : i32
    return %arg0, %c0_i32 : i32, i32
  }
  func.func @transform_1(%arg0: i32) -> (i32, i32) {
    %c0_i32 = arith.constant 0 : i32
    %c0_i32_0 = arith.constant 0 : i32
    return %arg0, %c0_i32 : i32, i32
  }
  func.func @transform_2(%arg0: i32) -> (i32, i32) {
    %c0_i32 = arith.constant 0 : i32
    %c0_i32_0 = arith.constant 0 : i32
    %c0_i32_1 = arith.constant 0 : i32
    return %c0_i32, %c0_i32_0 : i32, i32
  }
  func.func @transform_3(%arg0: i32) -> (i32, i32) {
    %c0_i32 = arith.constant 0 : i32
    %c0_i32_0 = arith.constant 0 : i32
    %c0_i32_1 = arith.constant 0 : i32
    return %c0_i32, %c0_i32_0 : i32, i32
  }
  func.func @transform_4(%arg0: i32) -> (i32, i32) {
    %c0_i32 = arith.constant 0 : i32
    %c0_i32_0 = arith.constant 0 : i32
    return %arg0, %c0_i32 : i32, i32
  }
}

</mosaic_0001>

<bundles_post_ra>
// kernel: tpu_custom_call.1
= control target key start
LH: loop header
LB: loop body
LE: loop exit
PB: predicated region body
PF: predicated region fallthrough
CT: control target
= control target key end

     0   :  { %9 = vsyncpa [#allocation3], 0  ;;  %s826_s0 = inlined_call_operand.vmem [shape: f32[16,128], index: 0, kind: input, shape index: {}]   ;;  %s827_s1 = inlined_call_operand.vmem [shape: f32[16,4], index: 1, kind: input, shape index: {}]   ;;  %s828_s2 = inlined_call_operand.hbm [shape: f32[128,128], index: 2, kind: input, shape index: {}]   ;;  %s829_s3 = inlined_call_operand.hbm [shape: f32[16,128], index: 3, kind: input, shape index: {}]   ;;  %s830_s4 = inlined_call_operand.hbm [shape: f32[16,128], index: 4, kind: output, shape index: {}]  }
   0x1   :  { %10 = vsyncpa [#allocation6], 0 }
   0x2   :  { %11 = vsyncpa [#allocation4], 0  ;;  %s662_s15 = smov [#allocation2]   ;;  %s590_s19 = scalar_lea.hbm %s828_s2, 2048 }
   0x3   :  { %s21_s16 = sshll.u32 %s662_s15, 4  ;;  %p591_p0 = scmp.ne.s32.totalorder %s828_s2, %s590_s19  ;;  %s22_s16 = int_to_ptr.vmem [resolvable:$true] %s21_s16 }
   0x4   :  { %p594_p1 = scmp.lt.u32.totalorder %s590_s19, %s828_s2 }
   0x6   :  { %p596_p2 = pnand %p594_p1, %p591_p0 }
   0x8   :  { %599 = shalt.err (!%p596_p2)
}
   0x9   :  { %s600_s24 = scalar_lea.vmem %s22_s16, 2048  ;;  %p605_p4 = scmp.lt.s32.totalorder %s22_s16, %s22_s16 }
   0xa   :  { %p601_p3 = scmp.ne.s32.totalorder %s22_s16, %s600_s24  ;;  %p606_p5 = scmp.lt.s32.totalorder %s600_s24, %s600_s24 }
   0xc   :  { %p607_p6 = por %p606_p5, %p605_p4 }
   0xe   :  { %p608_p7 = pnand %p607_p6, %p601_p3 }
  0x10   :  { %611 = shalt.err (!%p608_p7)
}
  0x11   :  { %s663_s25 = smov 128   ;;  %s664_s26 = smov 8  }
  0x12   :  { %27 = dma.hbm_to_vmem [thread:$0]  %s828_s2, 2048, %s22_s16, [#allocation3], %s663_s25, %s663_s25, %s664_s26  }
  0x13   :  { %s665_s29 = smov [#allocation5]   ;;  %s612_s7 = scalar_lea.hbm %s829_s3, 256 }
  0x14   :  { %s33_s30 = sshll.u32 %s665_s29, 4  ;;  %p613_p8 = scmp.ne.s32.totalorder %s829_s3, %s612_s7  ;;  %s34_s30 = int_to_ptr.vmem [resolvable:$true] %s33_s30 }
  0x15   :  { %p616_p9 = scmp.lt.u32.totalorder %s612_s7, %s829_s3 }
  0x17   :  { %p618_p10 = pnand %p616_p9, %p613_p8 }
  0x19   :  { %621 = shalt.err (!%p618_p10)
}
  0x1a   :  { %s622_s12 = scalar_lea.vmem %s34_s30, 256  ;;  %p627_p12 = scmp.lt.s32.totalorder %s34_s30, %s34_s30 }
  0x1b   :  { %p623_p11 = scmp.ne.s32.totalorder %s34_s30, %s622_s12  ;;  %p628_p13 = scmp.lt.s32.totalorder %s622_s12, %s622_s12 }
  0x1d   :  { %p629_p0 = por %p628_p13, %p627_p12 }
  0x1f   :  { %p630_p1 = pnand %p629_p0, %p623_p11 }
  0x21   :  { %633 = shalt.err (!%p630_p1)
}
  0x22   :  { %39 = dma.hbm_to_vmem [thread:$0]  %s829_s3, 256, %s34_s30, [#allocation6], %s663_s25, %s663_s25, %s664_s26  }
  0x23   :  { %656 = dma.done.wait [#allocation3], 2048  }
  0x24   :  { %657 = vsyncadd [#allocation3], 4294965248 }
  0x25   :  { %658 = dma.done.wait [#allocation6], 256  }
  0x26   :  { %659 = vsyncadd [#allocation6], 4294967040  ;;  %v666_v0 = vmov 1   ;;  %v667_v1 = vmov 0   ;;  %v733_v2 = vld [vmem:[%s827_s1] sm:$0xff]  ;;  %v738_v3 = vld [vmem:[%s827_s1 + $0x8] sm:$0xff] }
  0x27   :  { %557 = vset.pattern.permute.xlu0 %v666_v0  ;;  %555 = vset.pattern.permute.xlu1 %v667_v1  ;;  %v48_v4 = vld [vmem:[#allocation2] sm:$0xff]  ;;  %v272_v5 = vmul.f32 0.5, %v733_v2  ;;  %v49_v6 = vld [vmem:[#allocation2 + $0x8] sm:$0xff]  ;;  %v50_v7 = vld [vmem:[#allocation2 + $0x10] sm:$0xff]  ;;  %s668_s3 = smov 126   ;;  %v273_v11 = vmul.f32 0.5, %v738_v3 }
  0x28   :  { %v51_v8 = vld [vmem:[#allocation2 + $0x18] sm:$0xff]  ;;  %v512_v9 = vpack.c.bf16 %v49_v6, %v48_v4  ;;  %v52_v12 = vld [vmem:[#allocation2 + $0x20] sm:$0xff]  ;;  %v53_v13 = vld [vmem:[#allocation2 + $0x28] sm:$0xff]  ;;  %s669_s21 = smov 127   ;;  %v670_v46 = vmov 3   ;;  %v671_v47 = vmov 2  }
  0x29   :  { %v516_v10 = vpack.c.bf16 %v51_v8, %v50_v7  ;;  %276 = vrot.lane.b32.xlu0 %v272_v5, %s668_s3  ;;  %v520_v14 = vpack.c.bf16 %v53_v13, %v52_v12  ;;  %v46_v15 = vld [vmem:[%s826_s0] sm:$0xff]  ;;  %v54_v16 = vld [vmem:[#allocation2 + $0x30] sm:$0xff]  ;;  %v55_v17 = vld [vmem:[#allocation2 + $0x38] sm:$0xff] }
  0x2a   :  { %513 = vmatprep.subr.bf16.mxu0 %v512_v9  ;;  %509 = vmatprep.mubr.f32.mxu0 %v46_v15  ;;  %v524_v18 = vpack.c.bf16 %v55_v17, %v54_v16  ;;  %v56_v19 = vld [vmem:[#allocation2 + $0x40] sm:$0xff]  ;;  %v57_v20 = vld [vmem:[#allocation2 + $0x48] sm:$0xff]  ;;  %v58_v22 = vld [vmem:[#allocation2 + $0x50] sm:$0xff] }
  0x2b   :  { %515 = vmatpush3.bf16.msra.mxu0 %v512_v9  ;;  %v528_v21 = vpack.c.bf16 %v57_v20, %v56_v19  ;;  %v59_v23 = vld [vmem:[#allocation2 + $0x58] sm:$0xff]  ;;  %v60_v25 = vld [vmem:[#allocation2 + $0x60] sm:$0xff]  ;;  %v61_v26 = vld [vmem:[#allocation2 + $0x68] sm:$0xff] }
  0x2c   :  { %517 = vmatprep.subr.bf16.mxu0 %v516_v10  ;;  %v532_v24 = vpack.c.bf16 %v59_v23, %v58_v22  ;;  %v536_v27 = vpack.c.bf16 %v61_v26, %v60_v25  ;;  %v62_v28 = vld [vmem:[#allocation2 + $0x70] sm:$0xff]  ;;  %v63_v29 = vld [vmem:[#allocation2 + $0x78] sm:$0xff]  ;;  %v47_v31 = vld [vmem:[%s826_s0 + $0x8] sm:$0xff]  ;;  %s672_s0 = smov [#allocation7]  }
  0x2d   :  { %278 = vrot.lane.b32.xlu0 %v273_v11, %s668_s3  ;;  %v540_v30 = vpack.c.bf16 %v63_v29, %v62_v28  ;;  %v457_v60 = vld [vmem:[#allocation5 + $0x5] ss:$0 sm:$0xff]  ;;  %v455_v61 = vld [vmem:[#allocation5 + $0x4] ss:$0 sm:$0xff]  ;;  %s435_s22 = sshll.u32 %s672_s0, 4  ;;  %s436_s22 = int_to_ptr.vmem [resolvable:$true] %s435_s22 }
  0x2e   :  { %s634_s23 = scalar_lea.vmem %s436_s22, 256  ;;  %p639_p3 = scmp.lt.s32.totalorder %s436_s22, %s436_s22 }
  0x2f   :  { %519 = vmatpush3.bf16.msra.mxu0 %v516_v10  ;;  %p635_p2 = scmp.ne.s32.totalorder %s436_s22, %s634_s23  ;;  %p640_p4 = scmp.lt.s32.totalorder %s634_s23, %s634_s23 }
  0x30   :  { %521 = vmatprep.subr.bf16.mxu0 %v520_v14 }
  0x31   :  { %p641_p5 = por %p640_p4, %p639_p3 }
  0x33   :  { %523 = vmatpush3.bf16.msra.mxu0 %v520_v14  ;;  %p642_p6 = pnand %p641_p5, %p635_p2 }
  0x34   :  { %525 = vmatprep.subr.bf16.mxu0 %v524_v18 }
  0x37   :  { %527 = vmatpush3.bf16.msra.mxu0 %v524_v18 }
  0x38   :  { %529 = vmatprep.subr.bf16.mxu0 %v528_v21 }
  0x3b   :  { %531 = vmatpush3.bf16.msra.mxu0 %v528_v21 }
  0x3c   :  { %533 = vmatprep.subr.bf16.mxu0 %v532_v24 }
  0x3f   :  { %535 = vmatpush3.bf16.msra.mxu0 %v532_v24 }
  0x40   :  { %537 = vmatprep.subr.bf16.mxu0 %v536_v27 }
  0x43   :  { %539 = vmatpush3.bf16.msra.mxu0 %v536_v27 }
  0x44   :  { %541 = vmatprep.subr.bf16.mxu0 %v540_v30 }
  0x47   :  { %543 = vmatpush3.bf16.msra.mxu0 %v540_v30 }
  0x4a   :  { %510 = vmatmul.mubr.f32.vlgmr.msra.gmra.mrb[0].mxu0 %v47_v31 }
  0x9b   :  { %v277_v32 = vpop.permute.xlu0 %276 }
  0x9c   :  { %v282_v33 = vsub.f32 %v733_v2, %v277_v32  ;;  %v284_v34 = vadd.f32 %v277_v32, %v733_v2 }
  0x9e   :  { %v286_v35 = vsub.f32 %v284_v34, %v282_v33 }
  0x9f   :  { %v279_v36 = vpop.permute.xlu0 %278 }
  0xa0   :  { %v283_v37 = vsub.f32 %v738_v3, %v279_v36  ;;  %v285_v38 = vadd.f32 %v279_v36, %v738_v3  ;;  %290 = vrot.lane.b32.xlu1 %v286_v35, %s669_s21 }
  0xa2   :  { %339 = vperm.xlu0 %557, %v285_v38   ;;  %v287_v39 = vsub.f32 %v285_v38, %v283_v37 }
  0xa4   :  { %292 = vrot.lane.b32.xlu1 %v287_v39, %s669_s21 }
  0xa6   :  { %558 = vset.pattern.permute.xlu0 %v667_v1 }
  0xa7   :  { %300 = vperm.xlu0 %558, %v284_v34  }
  0xa8   :  { %305 = vperm.xlu1 %555, %v285_v38  }
  0xab   :  { %321 = vperm.xlu0 %558, %v283_v37  }
  0xac   :  { %316 = vperm.xlu1 %555, %v282_v33  }
  0xb0   :  { %556 = vset.pattern.permute.xlu1 %v666_v0 }
  0xb1   :  { %335 = vperm.xlu1 %556, %v284_v34   ;;  %v458_v34 = vld [vmem:[#allocation5 + $0x8] ss:$0 sm:$0xff] }
  0xb5   :  { %349 = vperm.xlu1 %556, %v282_v33  }
  0xb9   :  { %353 = vperm.xlu1 %556, %v283_v37  }
  0xbd   :  { %559 = vset.pattern.permute.xlu1 %v667_v1 }
 0x112   :  { %v291_v40 = vpop.permute.xlu1 %290 }
 0x113   :  { %v296_v41 = vmul.f32 %v291_v40, %v286_v35 }
 0x115   :  { %370 = vperm.xlu0 %558, %v296_v41  }
 0x116   :  { %v293_v42 = vpop.permute.xlu1 %292 }
 0x117   :  { %v297_v43 = vmul.f32 %v293_v42, %v287_v39 }
 0x119   :  { %203 = vperm.xlu0 %558, %v738_v3   ;;  %375 = vperm.xlu1 %559, %v297_v43  }
 0x11d   :  { %561 = vset.pattern.permute.xlu0 %v666_v0  ;;  %198 = vperm.xlu1 %559, %v733_v2   ;;  %v511_v44 = vpop.f32.mrb[0].mxu0 }
 0x11e   :  { %219 = vperm.xlu0 %561, %v738_v3   ;;  %v130_v45 = vpop.f32.mrb[1].mxu0  ;;  %v449_v49 = vmul.f32 -1.442695, %v511_v44 }
 0x11f   :  { %v448_v48 = vmul.f32 -1.442695, %v130_v45 }
 0x121   :  { %560 = vset.pattern.permute.xlu1 %v666_v0  ;;  %566 = vpow2.f32 %v448_v48  ;;  %v340_v56 = vpop.permute.xlu0 %339 }
 0x122   :  { %215 = vperm.xlu1 %560, %v733_v2   ;;  %563 = vset.pattern.permute.xlu0 %v670_v46  ;;  %568 = vpow2.f32 %v449_v49 }
 0x123   :  { %251 = vperm.xlu0 %563, %v733_v2  }
 0x126   :  { %562 = vset.pattern.permute.xlu1 %v671_v47  ;;  %v301_v59 = vpop.permute.xlu0 %300 }
 0x127   :  { %233 = vperm.xlu1 %562, %v733_v2   ;;  %565 = vset.pattern.permute.xlu0 %v667_v1  ;;  %v306_v50 = vpop.permute.xlu1 %305  ;;  %v456_v1 = vld [vmem:[#allocation5 + $0x7] ss:$0 sm:$0xff]  ;;  %v454_v2 = vld [vmem:[#allocation5 + $0x6] ss:$0 sm:$0xff] }
 0x128   :  { %v396_v9 = vmax.f32 %v301_v59, %v454_v2  ;;  %v403_v14 = vmax.f32 %v340_v56, %v456_v1  ;;  %v312_v15 = vmin.f32 %v301_v59, %v454_v2  ;;  %v347_v21 = vmin.f32 %v340_v56, %v456_v1 }
 0x129   :  { %v397_v22 = vmax.f32 %v306_v50, %v454_v2  ;;  %v313_v30 = vmin.f32 %v306_v50, %v454_v2 }
 0x12b   :  { %237 = vperm.xlu1 %562, %v738_v3   ;;  %v317_v51 = vpop.permute.xlu1 %316  ;;  %v567_v52 = vpop.eup %566 }
 0x12c   :  { %v145_v53 = vadd.f32 1.0, %v567_v52  ;;  %v569_v54 = vpop.eup %568  ;;  %v398_v4 = vmin.f32 %v317_v51, %v455_v61  ;;  %v328_v10 = vmax.f32 %v317_v51, %v455_v61 }
 0x12d   :  { %v146_v57 = vadd.f32 1.0, %v569_v54 }
 0x12e   :  { %570 = vrcp.f32 %v145_v53  ;;  %v400_v17 = vsub.f32 %v396_v9, %v398_v4  ;;  %v330_v26 = vsub.f32 %v312_v15, %v328_v10  ;;  %v450_v4 = vld [vmem:[#allocation5] ss:$0 sm:$0xff] }
 0x12f   :  { %564 = vset.pattern.permute.xlu1 %v670_v46  ;;  %572 = vrcp.f32 %v146_v57 }
 0x130   :  { %255 = vperm.xlu1 %564, %v738_v3   ;;  %v336_v55 = vpop.permute.xlu1 %335  ;;  %v322_v3 = vpop.permute.xlu0 %321  ;;  %v332_v36 = vmax.f32 %v330_v26, 0.0 }
 0x131   :  { %v402_v5 = vmax.f32 %v336_v55, %v456_v1  ;;  %v346_v11 = vmin.f32 %v336_v55, %v456_v1  ;;  %v399_v16 = vmin.f32 %v322_v3, %v455_v61  ;;  %v329_v25 = vmax.f32 %v322_v3, %v455_v61 }
 0x133   :  { %v401_v29 = vsub.f32 %v397_v22, %v399_v16  ;;  %v331_v35 = vsub.f32 %v313_v30, %v329_v25 }
 0x134   :  { %v350_v58 = vpop.permute.xlu1 %349 }
 0x135   :  { %v404_v63 = vmin.f32 %v350_v58, %v457_v60  ;;  %v360_v6 = vmax.f32 %v350_v58, %v457_v60  ;;  %v333_v43 = vmax.f32 %v331_v35, 0.0 }
 0x137   :  { %v406_v12 = vsub.f32 %v402_v5, %v404_v63  ;;  %v362_v18 = vsub.f32 %v346_v11, %v360_v6  ;;  %v795_v6 = vld [vmem:[#allocation5 + $0x3] ss:$0 sm:$0xff] }
 0x138   :  { %v766_v62 = vpop.eup %570  ;;  %v354_v0 = vpop.permute.xlu1 %353 }
 0x139   :  { %v405_v7 = vmin.f32 %v354_v0, %v457_v60  ;;  %v151_v8 = vsub.f32 1.0, %v766_v62  ;;  %v573_v13 = vpop.eup %572  ;;  %v361_v19 = vmax.f32 %v354_v0, %v457_v60  ;;  %v171_v20 = vadd.f32 1e-08, %v766_v62  ;;  %v451_v0 = vld [vmem:[#allocation5 + $0x1] ss:$0 sm:$0xff] }
 0x13a   :  { %v770_v27 = vmul.f32 %v406_v12, %v400_v17  ;;  %v152_v28 = vsub.f32 1.0, %v573_v13  ;;  %v364_v31 = vmax.f32 %v362_v18, 0.0  ;;  %v172_v39 = vadd.f32 1e-08, %v573_v13 }
 0x13b   :  { %v407_v23 = vsub.f32 %v403_v14, %v405_v7  ;;  %v157_v24 = vadd.f32 1e-08, %v151_v8  ;;  %v363_v32 = vsub.f32 %v347_v21, %v361_v19  ;;  %574 = vlog2.f32 %v171_v20 }
 0x13c   :  { %v158_v37 = vadd.f32 1e-08, %v152_v28  ;;  %v775_v41 = vmul.f32 %v364_v31, %v332_v36  ;;  %v167_v55 = vmul.f32 %v151_v8, %v151_v8  ;;  %v153_v57 = vmul.f32 %v766_v62, %v766_v62 }
 0x13d   :  { %v772_v33 = vmul.f32 %v407_v23, %v401_v29  ;;  %576 = vlog2.f32 %v157_v24  ;;  %v365_v40 = vmax.f32 %v363_v32, 0.0  ;;  %v154_v61 = vmul.f32 %v573_v13, %v573_v13  ;;  %v452_v13 = vld [vmem:[#allocation5 + $0x2] ss:$0 sm:$0xff] }
 0x13e   :  { %578 = vrcp.f32 %v770_v27  ;;  %v168_v2 = vmul.f32 %v152_v28, %v152_v28  ;;  %v169_v8 = vmul.f32 0.25, %v167_v55  ;;  %v155_v11 = vmul.f32 0.75, %v153_v57 }
 0x13f   :  { %580 = vrcp.f32 %v772_v33  ;;  %v784_v47 = vmul.f32 %v365_v40, %v333_v43  ;;  %v156_v16 = vmul.f32 0.75, %v154_v61 }
 0x140   :  { %582 = vlog2.f32 %v158_v37  ;;  %v170_v20 = vmul.f32 0.25, %v168_v2 }
 0x141   :  { %584 = vlog2.f32 %v172_v39 }
 0x145   :  { %v575_v49 = vpop.eup %574 }
 0x146   :  { %v174_v56 = vmul.f32 0.6931472, %v575_v49 }
 0x147   :  { %v577_v51 = vpop.eup %576 }
 0x148   :  { %v579_v53 = vpop.eup %578  ;;  %v160_v58 = vmul.f32 0.6931472, %v577_v51  ;;  %v177_v9 = vsub.f32 0.0, %v174_v56 }
 0x149   :  { %v792_v59 = vpop.eup %580  ;;  %v414_v60 = vmul.f32 %v579_v53, %v770_v27 }
 0x14a   :  { %v583_v63 = vpop.eup %582  ;;  %v163_v12 = vsub.f32 0.0, %v160_v58  ;;  %v415_v21 = vmul.f32 %v792_v59, %v772_v33  ;;  %v179_v24 = vmul.f32 %v177_v9, %v169_v8 }
 0x14b   :  { %v585_v3 = vpop.eup %584  ;;  %v416_v14 = vsub.f32 2.0, %v414_v60  ;;  %v162_v19 = vmul.f32 0.6931472, %v583_v63 }
 0x14c   :  { %v176_v25 = vmul.f32 0.6931472, %v585_v3  ;;  %v165_v31 = vmul.f32 %v163_v12, %v155_v11  ;;  %v417_v55 = vsub.f32 2.0, %v415_v21 }
 0x14d   :  { %v164_v40 = vsub.f32 0.0, %v162_v19 }
 0x14e   :  { %v178_v49 = vsub.f32 0.0, %v176_v25  ;;  %v181_v51 = vsub.f32 %v179_v24, %v165_v31  ;;  %v419_v2 = vmul.f32 %v792_v59, %v417_v55 }
 0x150   :  { %v180_v63 = vmul.f32 %v178_v49, %v170_v20 }
 0x194   :  { %v371_v38 = vpop.permute.xlu0 %370 }
 0x195   :  { %v382_v42 = vadd.f32 %v458_v34, %v371_v38 }
 0x197   :  { %v779_v44 = vsub.f32 %v382_v42, %v775_v41 }
 0x198   :  { %v781_v45 = vpop.permute.xlu0 %203  ;;  %v376_v46 = vpop.permute.xlu1 %375 }
 0x199   :  { %586 = vrcp.f32 %v779_v44  ;;  %v383_v48 = vadd.f32 %v458_v34, %v376_v46  ;;  %v410_v28 = vsub.f32 %v770_v27, %v779_v44  ;;  %v418_v34 = vmul.f32 %v579_v53, %v416_v14 }
 0x19a   :  { %v211_v43 = vsub.f32 %v781_v45, %v450_v4  ;;  %v183_v45 = vmul.f32 2.0, %v181_v51 }
 0x19b   :  { %v787_v50 = vsub.f32 %v383_v48, %v784_v47  ;;  %v420_v27 = vmul.f32 %v418_v34, %v410_v28 }
 0x19c   :  { %v199_v52 = vpop.permute.xlu1 %198  ;;  %v213_v60 = vand.u32 2147483647, %v211_v43 }
 0x19d   :  { %588 = vrcp.f32 %v787_v50  ;;  %v220_v54 = vpop.permute.xlu0 %219  ;;  %v210_v62 = vsub.f32 %v199_v52, %v450_v4  ;;  %v411_v61 = vsub.f32 %v772_v33, %v787_v50 }
 0x19e   :  { %v227_v36 = vsub.f32 %v220_v54, %v451_v0  ;;  %v166_v54 = vmul.f32 %v164_v40, %v156_v16 }
 0x19f   :  { %v212_v29 = vand.u32 2147483647, %v210_v62  ;;  %v421_v9 = vmul.f32 %v419_v2, %v411_v61 }
 0x1a0   :  { %v229_v56 = vand.u32 2147483647, %v227_v36  ;;  %v182_v62 = vsub.f32 %v180_v63, %v166_v54 }
 0x1a1   :  { %v216_v1 = vpop.permute.xlu1 %215 }
 0x1a2   :  { %v226_v5 = vsub.f32 %v216_v1, %v451_v0  ;;  %v252_v7 = vpop.permute.xlu0 %251  ;;  %v231_v4 = vadd.f32 %v229_v56, %v213_v60  ;;  %v184_v14 = vmul.f32 2.0, %v182_v62 }
 0x1a3   :  { %v587_v10 = vpop.eup %586  ;;  %v262_v18 = vsub.f32 %v252_v7, %v795_v6 }
 0x1a4   :  { %v388_v15 = vmul.f32 %v587_v10, %v779_v44  ;;  %v228_v17 = vand.u32 2147483647, %v226_v5 }
 0x1a5   :  { %v264_v39 = vand.u32 2147483647, %v262_v18 }
 0x1a6   :  { %v390_v22 = vsub.f32 2.0, %v388_v15  ;;  %v234_v23 = vpop.permute.xlu1 %233  ;;  %v230_v37 = vadd.f32 %v228_v17, %v212_v29 }
 0x1a7   :  { %v589_v26 = vpop.eup %588  ;;  %v244_v30 = vsub.f32 %v234_v23, %v452_v13 }
 0x1a8   :  { %v392_v32 = vmul.f32 %v587_v10, %v390_v22  ;;  %v389_v35 = vmul.f32 %v589_v26, %v787_v50 }
 0x1a9   :  { %v246_v38 = vand.u32 2147483647, %v244_v30 }
 0x1aa   :  { %v394_v42 = vmul.f32 %v392_v32, %v775_v41  ;;  %v391_v46 = vsub.f32 2.0, %v389_v35  ;;  %v238_v48 = vpop.permute.xlu1 %237 }
 0x1ab   :  { %v248_v44 = vadd.f32 %v246_v38, %v230_v37  ;;  %v245_v52 = vsub.f32 %v238_v48, %v452_v13 }
 0x1ac   :  { %v393_v53 = vmul.f32 %v589_v26, %v391_v46  ;;  %v422_v58 = vsub.f32 %v394_v42, %v420_v27 }
 0x1ad   :  { %v266_v57 = vadd.f32 %v264_v39, %v248_v44  ;;  %v247_v41 = vand.u32 2147483647, %v245_v52 }
 0x1ae   :  { %v395_v3 = vmul.f32 %v393_v53, %v784_v47  ;;  %v424_v8 = vmul.f32 2.0, %v422_v58 }
 0x1af   :  { %v268_v0 = vmul.f32 5.0, %v266_v57  ;;  %v256_v1 = vpop.permute.xlu1 %255  ;;  %v249_v10 = vadd.f32 %v247_v41, %v231_v4 }
 0x1b0   :  { %v263_v5 = vsub.f32 %v256_v1, %v795_v6  ;;  %v423_v50 = vsub.f32 %v395_v3, %v421_v9 }
 0x1b1   :  { %v270_v7 = vadd.f32 %v268_v0, %v183_v45 }
 0x1b2   :  { %v265_v11 = vand.u32 2147483647, %v263_v5  ;;  %v425_v13 = vmul.f32 2.0, %v423_v50 }
 0x1b3   :  { %v426_v12 = vsub.f32 %v270_v7, %v424_v8 }
 0x1b4   :  { %v267_v33 = vadd.f32 %v265_v11, %v249_v10 }
 0x1b5   :  { %428 = vst [vmem:[#allocation7] sm:$0xff] %v426_v12 }
 0x1b6   :  { %v269_v15 = vmul.f32 5.0, %v267_v33 }
 0x1b8   :  { %v271_v59 = vadd.f32 %v269_v15, %v184_v14 }
 0x1ba   :  { %v427_v47 = vsub.f32 %v271_v59, %v425_v13 }
 0x1bc   :  { %429 = vst [vmem:[#allocation7 + $0x8] sm:$0xff] %v427_v47 }
 0x1bd   :  { %645 = shalt.err (!%p642_p6)
}
 0x1be   :  { %s646_s28 = scalar_lea.hbm %s830_s4, 256 }
 0x1bf   :  { %p647_p7 = scmp.ne.s32.totalorder %s830_s4, %s646_s28  ;;  %p650_p8 = scmp.lt.u32.totalorder %s646_s28, %s830_s4 }
 0x1c1   :  { %p652_p9 = pnand %p650_p8, %p647_p7 }
 0x1c3   :  { %655 = shalt.err (!%p652_p9)
}
 0x1c4   :  { %441 = dma.vmem_to_hbm [thread:$0]  %s436_s22, 256, %s830_s4, [#allocation4], %s663_s25, %s663_s25, %s664_s26  }
 0x1c5   :  { %660 = dma.done.wait [#allocation4], 256  }
 0x1c6   :  { %661 = vsyncadd [#allocation4], 4294967040 }
 0x1c7   :  { %445 = vsyncpa [#allocation3], 1 }
 0x1c8   :  { %446 = vsyncpa [#allocation6], 1 }
 0x1c9   :  { %447 = vsyncpa [#allocation4], 1 }

</bundles_post_ra>
